<compile_context>
chip_gen: v5e
topology: v5e:2x2
jax: 0.10.0
libtpu: 0.0.40
codegen_flags: <defaults>
</compile_context>

<pallas_src>
import jax
import jax.numpy as jnp
from jax.experimental import pallas as pl
from jax.experimental.pallas import tpu as pltpu


def _round_up(x, m):
    return (x + m - 1) // m * m


def dense_model_kernel(x_ref, w1_ref, b1_ref, w2_ref, b2_ref, o_ref):
    # x:  (TILE_B, D)          f32  (cast to bf16 on-chip, right before the MXU)
    # w1: (D, HIDDEN_P)        bf16    b1: (1, HIDDEN_P)  f32
    # w2: (HIDDEN_P, OUT_P)    bf16    b2: (1, OUT_P)     f32
    # o:  (TILE_B, OUT_P)      bf16
    x_bf = x_ref[...].astype(jnp.bfloat16)
    h = jnp.dot(x_bf, w1_ref[...], preferred_element_type=jnp.float32)
    h = jnp.maximum(h + b1_ref[...], 0.0)            # bias + ReLU in f32 (VPU)
    # dropout(p=0.3): identity (eval mode)
    out = jnp.dot(h.astype(jnp.bfloat16), w2_ref[...],
                  preferred_element_type=jnp.float32)
    o_ref[...] = (out + b2_ref[...]).astype(o_ref.dtype)


def prepare_params(w1, b1, w2, b2):
    """One-time weight prep: pad hidden/out to 128 lanes, cast to bf16.

    w1: (D, 64), b1: (64,), w2: (64, 3), b2: (3,)  stored as (in, out).
    Zero-padded columns/rows are mathematically inert through ReLU and the
    second matmul.
    """
    d, hidden = w1.shape
    out_dim = w2.shape[1]
    hidden_p = max(_round_up(hidden, 128), 128)
    out_pad = max(_round_up(out_dim, 128), 128)

    w1_p = jnp.zeros((d, hidden_p), jnp.bfloat16).at[:, :hidden].set(
        w1.astype(jnp.bfloat16))
    b1_p = jnp.zeros((1, hidden_p), jnp.float32).at[:, :hidden].set(
        b1.astype(jnp.float32))
    w2_p = jnp.zeros((hidden_p, out_pad), jnp.bfloat16).at[:hidden, :out_dim].set(
        w2.astype(jnp.bfloat16))
    b2_p = jnp.zeros((1, out_pad), jnp.float32).at[:, :out_dim].set(
        b2.astype(jnp.float32))
    return w1_p, b1_p, w2_p, b2_p, out_dim


def _choose_tile_b(batch, d, hidden_p, out_pad):
    # Bytes of VMEM needed per batch row (double-buffered f32 x tile,
    # double-buffered bf16 out tile, f32 + bf16 h intermediates).
    per_row = 8 * d + 4 * out_pad + 6 * hidden_p
    resident = d * hidden_p * 2 + hidden_p * out_pad * 2 + (hidden_p + out_pad) * 4
    budget = max((20 << 20) - resident, 16 * per_row)
    tile_cap = max(16, min(2048, (budget // per_row) // 16 * 16))

    tile_b = min(tile_cap, _round_up(max(batch, 1), 16))
    # Guarantee grid >= 2 for mid/large batches so the "parallel" batch axis
    # actually shards across v7x's two TensorCores.
    if batch >= 256 and pl.cdiv(batch, tile_b) < 2:
        tile_b = _round_up((batch + 1) // 2, 16)
    return tile_b


def dense_model_forward(x_nchw, w1_p, b1_p, w2_p, b2_p, out_dim):
    """Fused DenseModel forward pass.

    x_nchw: (B, C, H, W) f32 -- flattened to (B, C*H*W) like torch .view.
    w1_p/b1_p/w2_p/b2_p: prepared (padded + cast) params from prepare_params.
    Returns (B, out_dim) f32.
    """
    batch = x_nchw.shape[0]
    x2d = x_nchw.reshape(batch, -1)                  # (B, D) f32, no extra copy
    d = x2d.shape[1]
    hidden_p = w1_p.shape[1]
    out_pad = w2_p.shape[1]
    assert w1_p.shape[0] == d, (w1_p.shape, d)

    tile_b = _choose_tile_b(batch, d, hidden_p, out_pad)
    grid = (pl.cdiv(batch, tile_b),)                 # partial last block is masked

    # VMEM request: actual need * 1.3, capped well under v7x's 64 MiB physical.
    vmem_need = (2 * tile_b * d * 4                  # x tiles, double-buffered, f32
                 + 2 * tile_b * out_pad * 2          # out tiles, double-buffered, bf16
                 + tile_b * hidden_p * (4 + 2)       # h intermediate (f32 + bf16 copy)
                 + d * hidden_p * 2                  # w1 resident (bf16)
                 + hidden_p * out_pad * 2            # w2 resident (bf16)
                 + (hidden_p + out_pad) * 4)         # biases (f32)
    vmem_limit = int(min(max(int(vmem_need * 1.3), 4 << 20), 36 << 20))

    cost = pl.CostEstimate(
        flops=2 * batch * d * hidden_p + 2 * batch * hidden_p * out_pad,
        transcendentals=0,
        bytes_accessed=(batch * d * 4                # x (f32)
                        + d * hidden_p * 2           # w1 (bf16)
                        + hidden_p * out_pad * 2     # w2 (bf16)
                        + (hidden_p + out_pad) * 4   # biases (f32)
                        + batch * out_pad * 2),      # output (bf16)
    )

    out = pl.pallas_call(
        dense_model_kernel,
        out_shape=jax.ShapeDtypeStruct((batch, out_pad), jnp.bfloat16),
        grid_spec=pltpu.PrefetchScalarGridSpec(
            num_scalar_prefetch=0,
            grid=grid,
            in_specs=[
                pl.BlockSpec((tile_b, d), lambda i: (i, 0)),          # x: tiled over batch
                pl.BlockSpec((d, hidden_p), lambda i: (0, 0)),        # w1: VMEM-resident
                pl.BlockSpec((1, hidden_p), lambda i: (0, 0)),        # b1: resident
                pl.BlockSpec((hidden_p, out_pad), lambda i: (0, 0)),  # w2: resident
                pl.BlockSpec((1, out_pad), lambda i: (0, 0)),         # b2: resident
            ],
            out_specs=pl.BlockSpec((tile_b, out_pad), lambda i: (i, 0)),
        ),
        compiler_params=pltpu.CompilerParams(
            dimension_semantics=("parallel",),
            vmem_limit_bytes=vmem_limit,
        ),
        cost_estimate=cost,
    )(x2d, w1_p, b1_p, w2_p, b2_p)

    # Drop lane padding of the output and return f32 (like the torch module).
    return out[:, :out_dim].astype(jnp.float32)


def init_params(input_unit, hidden=64, out_dim=3, key=None):
    """Deterministic init mimicking nn.Linear (uniform +-1/sqrt(fan_in))."""
    if key is None:
        key = jax.random.PRNGKey(42)
    k1, k2, k3, k4 = jax.random.split(key, 4)
    bound1 = 1.0 / jnp.sqrt(input_unit)
    bound2 = 1.0 / jnp.sqrt(hidden)
    # Stored as (in, out) so the kernel does x @ W (torch stores (out, in)).
    w1 = jax.random.uniform(k1, (input_unit, hidden), jnp.float32, -bound1, bound1)
    b1 = jax.random.uniform(k2, (hidden,), jnp.float32, -bound1, bound1)
    w2 = jax.random.uniform(k3, (hidden, out_dim), jnp.float32, -bound2, bound2)
    b2 = jax.random.uniform(k4, (out_dim,), jnp.float32, -bound2, bound2)
    return w1, b1, w2, b2


if __name__ == "__main__":
    # Small shapes consistent with the module: B=2, C=4, H=W=16 -> input_unit=1024.
    B, C, H, W = 2, 4, 16, 16
    input_unit = C * H * W

    key = jax.random.PRNGKey(0)
    x = jax.random.normal(key, (B, C, H, W), jnp.float32)

    w1, b1, w2, b2 = init_params(input_unit)
    w1_p, b1_p, w2_p, b2_p, out_dim = prepare_params(w1, b1, w2, b2)

    out = jax.block_until_ready(
        dense_model_forward(x, w1_p, b1_p, w2_p, b2_p, out_dim))

    # Reference in plain JAX (f32; eval-mode dropout == identity).  Tolerance is
    # loosened because the kernel uses bf16 MXU inputs (f32 accumulate) and a
    # bf16 output writeback.
    x2d = x.reshape(B, -1)
    ref = jnp.maximum(x2d @ w1 + b1, 0.0) @ w2 + b2
    assert out.shape == (B, 3), out.shape
    assert jnp.allclose(out, ref, atol=2e-2, rtol=2e-2), (out, ref)

    print("KERNEL_OK")
</pallas_src>

<mosaic_0001>
module attributes {stable_mosaic.version = 11 : i64} {
  func.func @dense_model_kernel(%arg0: i32, %arg1: memref<16x1024xf32, #tpu.memory_space<vmem>>, %arg2: memref<1024x128xbf16, #tpu.memory_space<vmem>>, %arg3: memref<1x128xf32, #tpu.memory_space<vmem>>, %arg4: memref<128x128xbf16, #tpu.memory_space<vmem>>, %arg5: memref<1x128xf32, #tpu.memory_space<vmem>>, %arg6: memref<16x128xbf16, #tpu.memory_space<vmem>>) attributes {dimension_semantics = [#tpu.dimension_semantics<parallel>], iteration_bounds = array<i64: 1>, scalar_prefetch = 0 : i64, scratch_operands = 0 : i64, tpu.core_type = #tpu.core_type<tc>, window_params = [{transform_indices = @transform_0, window_bounds = array<i64: 16, 1024>}, {pipeline_mode = #tpu.pipeline_mode<synchronous>, transform_indices = @transform_1, window_bounds = array<i64: 1024, 128>}, {pipeline_mode = #tpu.pipeline_mode<synchronous>, transform_indices = @transform_2, window_bounds = array<i64: 1, 128>}, {pipeline_mode = #tpu.pipeline_mode<synchronous>, transform_indices = @transform_3, window_bounds = array<i64: 128, 128>}, {pipeline_mode = #tpu.pipeline_mode<synchronous>, transform_indices = @transform_4, window_bounds = array<i64: 1, 128>}, {transform_indices = @transform_5, window_bounds = array<i64: 16, 128>}]} {
    %c0 = arith.constant 0 : index
    %c0_0 = arith.constant 0 : index
    %0 = vector.load %arg1[%c0, %c0_0] : memref<16x1024xf32, #tpu.memory_space<vmem>>, vector<16x1024xf32>
    %1 = arith.truncf %0 : vector<16x1024xf32> to vector<16x1024xbf16>
    %c0_1 = arith.constant 0 : index
    %c0_2 = arith.constant 0 : index
    %2 = vector.load %arg2[%c0_1, %c0_2] : memref<1024x128xbf16, #tpu.memory_space<vmem>>, vector<1024x128xbf16>
    %cst = arith.constant dense<0.000000e+00> : vector<16x128xf32>
    %3 = tpu.matmul %1, %2, %cst {dimension_numbers = #tpu.dot_dimension_numbers<[1], [0], [0], [1], [0, 0, 1, 1], [], []>} : vector<16x1024xbf16>, vector<1024x128xbf16>, vector<16x128xf32> -> vector<16x128xf32>
    %c0_3 = arith.constant 0 : index
    %c0_4 = arith.constant 0 : index
    %4 = vector.load %arg3[%c0_3, %c0_4] : memref<1x128xf32, #tpu.memory_space<vmem>>, vector<1x128xf32>
    %5 = vector.broadcast %4 : vector<1x128xf32> to vector<16x128xf32>
    %6 = arith.addf %3, %5 : vector<16x128xf32>
    %cst_5 = arith.constant 0.000000e+00 : f32
    %7 = vector.broadcast %cst_5 : f32 to vector<16x128xf32>
    %8 = arith.maximumf %6, %7 : vector<16x128xf32>
    %9 = arith.truncf %8 : vector<16x128xf32> to vector<16x128xbf16>
    %c0_6 = arith.constant 0 : index
    %c0_7 = arith.constant 0 : index
    %10 = vector.load %arg4[%c0_6, %c0_7] : memref<128x128xbf16, #tpu.memory_space<vmem>>, vector<128x128xbf16>
    %cst_8 = arith.constant dense<0.000000e+00> : vector<16x128xf32>
    %11 = tpu.matmul %9, %10, %cst_8 {dimension_numbers = #tpu.dot_dimension_numbers<[1], [0], [0], [1], [0, 0, 1, 1], [], []>} : vector<16x128xbf16>, vector<128x128xbf16>, vector<16x128xf32> -> vector<16x128xf32>
    %c0_9 = arith.constant 0 : index
    %c0_10 = arith.constant 0 : index
    %12 = vector.load %arg5[%c0_9, %c0_10] : memref<1x128xf32, #tpu.memory_space<vmem>>, vector<1x128xf32>
    %13 = vector.broadcast %12 : vector<1x128xf32> to vector<16x128xf32>
    %14 = arith.addf %11, %13 : vector<16x128xf32>
    %15 = arith.truncf %14 : vector<16x128xf32> to vector<16x128xbf16>
    %c0_11 = arith.constant 0 : index
    %c0_12 = arith.constant 0 : index
    %16 = vector.load %arg6[%c0_11, %c0_12] : memref<16x128xbf16, #tpu.memory_space<vmem>>, vector<16x128xbf16>
    tpu.vector_store %arg6[%c0_11, %c0_12], %15 {strides = array<i32>} : memref<16x128xbf16, #tpu.memory_space<vmem>>, vector<16x128xbf16>,
    return
  }
  func.func @transform_0(%arg0: i32) -> (i32, i32) {
    %c0_i32 = arith.constant 0 : i32
    %c0_i32_0 = arith.constant 0 : i32
    return %arg0, %c0_i32 : i32, i32
  }
  func.func @transform_1(%arg0: i32) -> (i32, i32) {
    %c0_i32 = arith.constant 0 : i32
    %c0_i32_0 = arith.constant 0 : i32
    %c0_i32_1 = arith.constant 0 : i32
    return %c0_i32, %c0_i32_0 : i32, i32
  }
  func.func @transform_2(%arg0: i32) -> (i32, i32) {
    %c0_i32 = arith.constant 0 : i32
    %c0_i32_0 = arith.constant 0 : i32
    %c0_i32_1 = arith.constant 0 : i32
    return %c0_i32, %c0_i32_0 : i32, i32
  }
  func.func @transform_3(%arg0: i32) -> (i32, i32) {
    %c0_i32 = arith.constant 0 : i32
    %c0_i32_0 = arith.constant 0 : i32
    %c0_i32_1 = arith.constant 0 : i32
    return %c0_i32, %c0_i32_0 : i32, i32
  }
  func.func @transform_4(%arg0: i32) -> (i32, i32) {
    %c0_i32 = arith.constant 0 : i32
    %c0_i32_0 = arith.constant 0 : i32
    %c0_i32_1 = arith.constant 0 : i32
    return %c0_i32, %c0_i32_0 : i32, i32
  }
  func.func @transform_5(%arg0: i32) -> (i32, i32) {
    %c0_i32 = arith.constant 0 : i32
    %c0_i32_0 = arith.constant 0 : i32
    return %arg0, %c0_i32 : i32, i32
  }
}

</mosaic_0001>

<bundles_post_ra>
// kernel: tpu_custom_call.1
= control target key start
LH: loop header
LB: loop body
LE: loop exit
PB: predicated region body
PF: predicated region fallthrough
CT: control target
= control target key end

     0   :  { %10 = vsyncpa [#allocation3], 0  ;;  %s1505_s0 = inlined_call_operand.hbm [shape: f32[2,1024], index: 0, kind: input, shape index: {}]   ;;  %s1506_s1 = inlined_call_operand.hbm [shape: bf16[1024,128], index: 1, kind: input, shape index: {}]   ;;  %s1507_s2 = inlined_call_operand.vmem [shape: f32[1,128], index: 2, kind: input, shape index: {}]   ;;  %s1508_s3 = inlined_call_operand.hbm [shape: bf16[128,128], index: 3, kind: input, shape index: {}]   ;;  %s1509_s4 = inlined_call_operand.vmem [shape: f32[1,128], index: 4, kind: input, shape index: {}]   ;;  %s1510_s5 = inlined_call_operand.hbm [shape: bf16[2,128], index: 5, kind: output, shape index: {}]  }
   0x1   :  { %11 = vsyncpa [#allocation6], 0 }
   0x2   :  { %12 = vsyncpa [#allocation4], 0  ;;  %s30_s20 = sshll.u32 %s1506_s1, 4  ;;  %s31_s20 = int_to_ptr.hbm [resolvable:$true] %s30_s20 }
   0x3   :  { %16 = vsyncadd [#allocation3], 1792  ;;  %s1419_s21 = smov [#allocation5]   ;;  %s17_s25 = sshll.u32 %s1505_s0, 4  ;;  %s18_s25 = int_to_ptr.hbm [resolvable:$true] %s17_s25 }
   0x4   :  { %s32_s22 = sshll.u32 %s1419_s21, 4  ;;  %s1420_s26 = smov 64   ;;  %s33_s22 = int_to_ptr.vmem [resolvable:$true] %s32_s22 }
   0x5   :  { %s1421_s27 = smov 4   ;;  %s1422_s28 = smov [#allocation2]  }
   0x6   :  { %38 = dma.hbm_to_vmem [thread:$0]  %s31_s20, 8192, %s33_s22, [#allocation6], %s1420_s26, %s1420_s26, %s1421_s27  }
   0x7   :  { %s19_s29 = sshll.u32 %s1422_s28, 4  ;;  %s1423_s30 = smov 256   ;;  %s20_s29 = int_to_ptr.vmem [resolvable:$true] %s19_s29 }
   0x8   :  { %s1424_s6 = smov 16   ;;  %s45_s8 = sshll.u32 %s1508_s3, 4  ;;  %s46_s8 = int_to_ptr.hbm [resolvable:$true] %s45_s8 }
   0x9   :  { %25 = dma.hbm_to_vmem [thread:$0]  %s18_s25, 256, %s20_s29, [#allocation3], %s1423_s30, %s1423_s30, %s1424_s6  }
   0xa   :  { %s1425_s9 = smov [#allocation7]  }
   0xb   :  { %s47_s10 = sshll.u32 %s1425_s9, 4  ;;  %s48_s10 = int_to_ptr.vmem [resolvable:$true] %s47_s10 }
   0xc   :  { %53 = dma.hbm_to_vmem [thread:$0]  %s46_s8, 1024, %s48_s10, [#allocation6], %s1420_s26, %s1420_s26, %s1421_s27  }
   0xd   :  { %1413 = dma.done.wait [#allocation3], 2048  }
   0xe   :  { %1414 = vsyncadd [#allocation3], 4294965248 }
   0xf   :  { %1415 = dma.done.wait [#allocation6], 9216  }
  0x10   :  { %1416 = vsyncadd [#allocation6], 4294958080  ;;  %v1241_v0 = vld [vmem:[#allocation5 + $0x38] sm:$0xff]  ;;  %v1240_v4 = vld [vmem:[#allocation5 + $0x30] sm:$0xff]  ;;  %vm882_vm0 = vcmask 1040384   ;;  %vm886_vm1 = vcmask 1041409  }
  0x11   :  { %v1249_v1 = vld [vmem:[#allocation5 + $0x78] sm:$0xff]  ;;  %679 = vmatpush.bf16.msra.mxu0 %v1241_v0  ;;  %v1248_v5 = vld [vmem:[#allocation5 + $0x70] sm:$0xff]  ;;  %v1239_v8 = vld [vmem:[#allocation5 + $0x28] sm:$0xff]  ;;  %vm890_vm2 = vcmask 1042434   ;;  %vm894_vm3 = vcmask 1043459  }
  0x12   :  { %v1257_v2 = vld [vmem:[#allocation5 + $0xb8] sm:$0xff]  ;;  %693 = vmatpush.bf16.msra.mxu1 %v1249_v1  ;;  %v1256_v6 = vld [vmem:[#allocation5 + $0xb0] sm:$0xff]  ;;  %v1247_v9 = vld [vmem:[#allocation5 + $0x68] sm:$0xff] }
  0x13   :  { %v1265_v3 = vld [vmem:[#allocation5 + $0xf8] sm:$0xff]  ;;  %707 = vmatpush.bf16.msra.mxu2 %v1257_v2  ;;  %v1264_v7 = vld [vmem:[#allocation5 + $0xf0] sm:$0xff]  ;;  %v1255_v10 = vld [vmem:[#allocation5 + $0xa8] sm:$0xff] }
  0x14   :  { %721 = vmatpush.bf16.msra.mxu3 %v1265_v3  ;;  %v1263_v11 = vld [vmem:[#allocation5 + $0xe8] sm:$0xff]  ;;  %v1238_v12 = vld [vmem:[#allocation5 + $0x20] sm:$0xff]  ;;  %v1237_v16 = vld [vmem:[#allocation5 + $0x18] sm:$0xff] }
  0x15   :  { %680 = vmatpush.bf16.msra.mxu0 %v1240_v4  ;;  %v1246_v13 = vld [vmem:[#allocation5 + $0x60] sm:$0xff]  ;;  %v70_v18 = vld [vmem:[#allocation2 + $0x10] sm:$0xff]  ;;  %v1245_v19 = vld [vmem:[#allocation5 + $0x58] sm:$0xff] }
  0x16   :  { %694 = vmatpush.bf16.msra.mxu1 %v1248_v5  ;;  %v1254_v14 = vld [vmem:[#allocation5 + $0xa0] sm:$0xff]  ;;  %v74_v21 = vld [vmem:[#allocation2 + $0x30] sm:$0xff]  ;;  %v1253_v22 = vld [vmem:[#allocation5 + $0x98] sm:$0xff]  ;;  %102 = vst [vmem:[#allocation1 + $0x1] ss:$4 sm:$0xff] %v70_v18 }
  0x17   :  { %708 = vmatpush.bf16.msra.mxu2 %v1256_v6  ;;  %v1262_v15 = vld [vmem:[#allocation5 + $0xe0] sm:$0xff]  ;;  %v1261_v23 = vld [vmem:[#allocation5 + $0xd8] sm:$0xff]  ;;  %106 = vst [vmem:[#allocation1 + $0x3] ss:$4 sm:$0xff] %v74_v21  ;;  %v1236_v24 = vld [vmem:[#allocation5 + $0x10] sm:$0xff] }
  0x18   :  { %722 = vmatpush.bf16.msra.mxu3 %v1264_v7  ;;  %v68_v17 = vld [vmem:[#allocation2] sm:$0xff]  ;;  %v1244_v25 = vld [vmem:[#allocation5 + $0x50] sm:$0xff]  ;;  %v1235_v28 = vld [vmem:[#allocation5 + $0x8] sm:$0xff] }
  0x19   :  { %681 = vmatpush.bf16.msra.mxu0 %v1239_v8  ;;  %v72_v20 = vld [vmem:[#allocation2 + $0x20] sm:$0xff]  ;;  %100 = vst [vmem:[#allocation1] ss:$4 sm:$0xff] %v68_v17  ;;  %v1252_v26 = vld [vmem:[#allocation5 + $0x90] sm:$0xff]  ;;  %v1243_v29 = vld [vmem:[#allocation5 + $0x48] sm:$0xff] }
  0x1a   :  { %695 = vmatpush.bf16.msra.mxu1 %v1247_v9  ;;  %104 = vst [vmem:[#allocation1 + $0x2] ss:$4 sm:$0xff] %v72_v20  ;;  %v1260_v27 = vld [vmem:[#allocation5 + $0xd0] sm:$0xff]  ;;  %v69_v30 = vld [vmem:[#allocation2 + $0x8] sm:$0xff]  ;;  %v71_v33 = vld [vmem:[#allocation2 + $0x18] sm:$0xff] }
  0x1b   :  { %709 = vmatpush.bf16.msra.mxu2 %v1255_v10  ;;  %v1251_v31 = vld [vmem:[#allocation5 + $0x88] sm:$0xff]  ;;  %108 = vst [vmem:[#allocation1 + $0x20] ss:$4 sm:$0xff] %v69_v30  ;;  %v76_v34 = vld [vmem:[#allocation2 + $0x40] sm:$0xff]  ;;  %v78_v35 = vld [vmem:[#allocation2 + $0x50] sm:$0xff] }
  0x1c   :  { %723 = vmatpush.bf16.msra.mxu3 %v1263_v11  ;;  %v1259_v32 = vld [vmem:[#allocation5 + $0xc8] sm:$0xff]  ;;  %v80_v36 = vld [vmem:[#allocation2 + $0x60] sm:$0xff]  ;;  %110 = vst [vmem:[#allocation1 + $0x21] ss:$4 sm:$0xff] %v71_v33  ;;  %v82_v44 = vld [vmem:[#allocation2 + $0x70] sm:$0xff] }
  0x1d   :  { %682 = vmatpush.bf16.msra.mxu0 %v1238_v12  ;;  %v1234_v37 = vld [vmem:[#allocation5] sm:$0xff]  ;;  %v1273_v46 = vld [vmem:[#allocation5 + $0x138] sm:$0xff]  ;;  %v73_v47 = vld [vmem:[#allocation2 + $0x28] sm:$0xff] }
  0x1e   :  { %696 = vmatpush.bf16.msra.mxu1 %v1246_v13  ;;  %v1242_v42 = vld [vmem:[#allocation5 + $0x40] sm:$0xff]  ;;  %v1281_v48 = vld [vmem:[#allocation5 + $0x178] sm:$0xff]  ;;  %112 = vst [vmem:[#allocation1 + $0x22] ss:$4 sm:$0xff] %v73_v47  ;;  %v1272_v52 = vld [vmem:[#allocation5 + $0x130] sm:$0xff] }
  0x1f   :  { %710 = vmatpush.bf16.msra.mxu2 %v1254_v14  ;;  %v1250_v43 = vld [vmem:[#allocation5 + $0x80] sm:$0xff]  ;;  %v75_v49 = vld [vmem:[#allocation2 + $0x38] sm:$0xff]  ;;  %v1280_v53 = vld [vmem:[#allocation5 + $0x170] sm:$0xff] }
  0x20   :  { %724 = vmatpush.bf16.msra.mxu3 %v1262_v15  ;;  %v1258_v45 = vld [vmem:[#allocation5 + $0xc0] sm:$0xff]  ;;  %v1289_v50 = vld [vmem:[#allocation5 + $0x1b8] sm:$0xff]  ;;  %114 = vst [vmem:[#allocation1 + $0x23] ss:$4 sm:$0xff] %v75_v49  ;;  %v1288_v54 = vld [vmem:[#allocation5 + $0x1b0] sm:$0xff] }
  0x21   :  { %683 = vmatpush.bf16.msra.mxu0 %v1237_v16  ;;  %v115_v38 = vld.sshfl [vmem:[#allocation1] sm:$0xff pattern:$0x73625140]  ;;  %v1468_v39 = vld.sshfl [vmem:[#allocation1 + $0x8] sm:$0xff pattern:$0x73625140] }
  0x22   :  { %697 = vmatpush.bf16.msra.mxu1 %v1245_v19  ;;  %v117_v40 = vld.sshfl [vmem:[#allocation1 + $0x10] sm:$0xff pattern:$0x73625140]  ;;  %v1470_v41 = vld.sshfl [vmem:[#allocation1 + $0x18] sm:$0xff pattern:$0x73625140] }
  0x23   :  { %711 = vmatpush.bf16.msra.mxu2 %v1253_v22  ;;  %123 = vst [vmem:[#allocation1] ss:$4 sm:$0xff] %v76_v34  ;;  %v1297_v51 = vld [vmem:[#allocation5 + $0x1f8] sm:$0xff]  ;;  %v1296_v55 = vld [vmem:[#allocation5 + $0x1f0] sm:$0xff]  ;;  %v1271_v56 = vld [vmem:[#allocation5 + $0x128] sm:$0xff] }
  0x24   :  { %725 = vmatpush.bf16.msra.mxu3 %v1261_v23  ;;  %124 = vst [vmem:[#allocation1 + $0x1] ss:$4 sm:$0xff] %v78_v35  ;;  %v1279_v57 = vld [vmem:[#allocation5 + $0x168] sm:$0xff]  ;;  %v79_v63 = vld [vmem:[#allocation2 + $0x58] sm:$0xff]  ;;  %v1270_v11 = vld [vmem:[#allocation5 + $0x120] sm:$0xff] }
  0x25   :  { %684 = vmatpush.bf16.msra.mxu0 %v1236_v24  ;;  %125 = vst [vmem:[#allocation1 + $0x2] ss:$4 sm:$0xff] %v80_v36  ;;  %v1287_v58 = vld [vmem:[#allocation5 + $0x1a8] sm:$0xff]  ;;  %v1278_v12 = vld [vmem:[#allocation5 + $0x160] sm:$0xff]  ;;  %v83_v13 = vld [vmem:[#allocation2 + $0x78] sm:$0xff] }
  0x26   :  { %698 = vmatpush.bf16.msra.mxu1 %v1244_v25  ;;  %126 = vst [vmem:[#allocation1 + $0x3] ss:$4 sm:$0xff] %v82_v44  ;;  %v1295_v59 = vld [vmem:[#allocation5 + $0x1e8] sm:$0xff]  ;;  %v1286_v14 = vld [vmem:[#allocation5 + $0x1a0] sm:$0xff]  ;;  %v1269_v16 = vld [vmem:[#allocation5 + $0x118] sm:$0xff] }
  0x27   :  { %712 = vmatpush.bf16.msra.mxu2 %v1252_v26  ;;  %v77_v60 = vld [vmem:[#allocation2 + $0x48] sm:$0xff]  ;;  %v1474_v7 = vld.sshfl [vmem:[#allocation1 + $0x20] sm:$0xff pattern:$0x73625140]  ;;  %v1294_v15 = vld [vmem:[#allocation5 + $0x1e0] sm:$0xff] }
  0x28   :  { %726 = vmatpush.bf16.msra.mxu3 %v1260_v27  ;;  %v81_v4 = vld [vmem:[#allocation2 + $0x68] sm:$0xff]  ;;  %v1476_v8 = vld.sshfl [vmem:[#allocation1 + $0x28] sm:$0xff pattern:$0x73625140]  ;;  %v1277_v17 = vld [vmem:[#allocation5 + $0x158] sm:$0xff] }
  0x29   :  { %685 = vmatpush.bf16.msra.mxu0 %v1235_v28  ;;  %v1478_v9 = vld.sshfl [vmem:[#allocation1 + $0x30] sm:$0xff pattern:$0x73625140]  ;;  %v1480_v10 = vld.sshfl [vmem:[#allocation1 + $0x38] sm:$0xff pattern:$0x73625140] }
  0x2a   :  { %699 = vmatpush.bf16.msra.mxu1 %v1243_v29  ;;  %127 = vst [vmem:[#allocation1 + $0x20] ss:$4 sm:$0xff] %v77_v60  ;;  %v1285_v18 = vld [vmem:[#allocation5 + $0x198] sm:$0xff]  ;;  %v1268_v20 = vld [vmem:[#allocation5 + $0x110] sm:$0xff]  ;;  %v1267_v24 = vld [vmem:[#allocation5 + $0x108] sm:$0xff] }
  0x2b   :  { %713 = vmatpush.bf16.msra.mxu2 %v1251_v31  ;;  %128 = vst [vmem:[#allocation1 + $0x21] ss:$4 sm:$0xff] %v79_v63  ;;  %v1293_v19 = vld [vmem:[#allocation5 + $0x1d8] sm:$0xff]  ;;  %v1276_v21 = vld [vmem:[#allocation5 + $0x150] sm:$0xff]  ;;  %v1275_v25 = vld [vmem:[#allocation5 + $0x148] sm:$0xff] }
  0x2c   :  { %727 = vmatpush.bf16.msra.mxu3 %v1259_v32  ;;  %129 = vst [vmem:[#allocation1 + $0x22] ss:$4 sm:$0xff] %v81_v4  ;;  %v1284_v22 = vld [vmem:[#allocation5 + $0x190] sm:$0xff]  ;;  %v1283_v26 = vld [vmem:[#allocation5 + $0x188] sm:$0xff]  ;;  %v1266_v28 = vld [vmem:[#allocation5 + $0x100] sm:$0xff] }
  0x2d   :  { %686 = vmatpush.bf16.msra.mxu0 %v1234_v37  ;;  %v133_v61 = vld.sshfl [vmem:[#allocation1 + $0x10] sm:$0xff pattern:$0x73625140]  ;;  %v131_v62 = vld.sshfl [vmem:[#allocation1] sm:$0xff pattern:$0x73625140] }
  0x2e   :  { %700 = vmatpush.bf16.msra.mxu1 %v1242_v42  ;;  %v157_v0 = vpack.c.bf16 %v133_v61, %v117_v40  ;;  %v155_v1 = vpack.c.bf16 %v131_v62, %v115_v38  ;;  %v134_v2 = vld.sshfl [vmem:[#allocation1 + $0x18] sm:$0xff pattern:$0x73625140]  ;;  %v132_v3 = vld.sshfl [vmem:[#allocation1 + $0x8] sm:$0xff pattern:$0x73625140] }
  0x2f   :  { %714 = vmatpush.bf16.msra.mxu2 %v1250_v43  ;;  %v158_v5 = vpack.c.bf16 %v134_v2, %v1470_v41  ;;  %v156_v6 = vpack.c.bf16 %v132_v3, %v1468_v39  ;;  %130 = vst [vmem:[#allocation1 + $0x23] ss:$4 sm:$0xff] %v83_v13  ;;  %v1292_v23 = vld [vmem:[#allocation5 + $0x1d0] sm:$0xff]  ;;  %v1291_v27 = vld [vmem:[#allocation5 + $0x1c8] sm:$0xff]  ;;  %v1274_v29 = vld [vmem:[#allocation5 + $0x140] sm:$0xff] }
  0x30   :  { %728 = vmatpush.bf16.msra.mxu3 %v1258_v45  ;;  %687 = vmatmul.bf16.vlgmr.msra.gmra.mxu0 %v155_v1  ;;  %v1282_v30 = vld [vmem:[#allocation5 + $0x180] sm:$0xff]  ;;  %v1305_v40 = vld [vmem:[#allocation7 + $0x38] sm:$0xff]  ;;  %v1304_v41 = vld [vmem:[#allocation7 + $0x30] sm:$0xff] }
  0x31   :  { %735 = vmatpush.bf16.msrb.mxu0 %v1273_v46  ;;  %701 = vmatmul.bf16.vlgmr.msra.gmra.mxu1 %v156_v6  ;;  %v1290_v31 = vld [vmem:[#allocation5 + $0x1c0] sm:$0xff]  ;;  %v1303_v42 = vld [vmem:[#allocation7 + $0x28] sm:$0xff]  ;;  %v1301_v44 = vld [vmem:[#allocation7 + $0x18] sm:$0xff] }
  0x32   :  { %749 = vmatpush.bf16.msrb.mxu1 %v1281_v48  ;;  %715 = vmatmul.bf16.vlgmr.msra.gmra.mxu2 %v157_v0  ;;  %v1302_v43 = vld [vmem:[#allocation7 + $0x20] sm:$0xff]  ;;  %v1300_v45 = vld [vmem:[#allocation7 + $0x10] sm:$0xff]  ;;  %v1299_v47 = vld [vmem:[#allocation7 + $0x8] sm:$0xff] }
  0x33   :  { %763 = vmatpush.bf16.msrb.mxu2 %v1289_v50  ;;  %729 = vmatmul.bf16.vlgmr.msra.gmra.mxu3 %v158_v5  ;;  %v1298_v49 = vld [vmem:[#allocation7] sm:$0xff]  ;;  %v1315_v50 = vld [vmem:[%s1507_s2] ss:$0 sm:$0xff] }
  0x34   :  { %777 = vmatpush.bf16.msrb.mxu3 %v1297_v51 }
  0x35   :  { %736 = vmatpush.bf16.msrb.mxu0 %v1272_v52 }
  0x36   :  { %750 = vmatpush.bf16.msrb.mxu1 %v1280_v53  ;;  %v135_v32 = vld.sshfl [vmem:[#allocation1 + $0x20] sm:$0xff pattern:$0x73625140]  ;;  %v136_v33 = vld.sshfl [vmem:[#allocation1 + $0x28] sm:$0xff pattern:$0x73625140] }
  0x37   :  { %764 = vmatpush.bf16.msrb.mxu2 %v1288_v54  ;;  %v137_v34 = vld.sshfl [vmem:[#allocation1 + $0x30] sm:$0xff pattern:$0x73625140]  ;;  %v138_v35 = vld.sshfl [vmem:[#allocation1 + $0x38] sm:$0xff pattern:$0x73625140]  ;;  %v159_v36 = vpack.c.bf16 %v135_v32, %v1474_v7  ;;  %v160_v37 = vpack.c.bf16 %v136_v33, %v1476_v8 }
  0x38   :  { %778 = vmatpush.bf16.msrb.mxu3 %v1296_v55  ;;  %v161_v38 = vpack.c.bf16 %v137_v34, %v1478_v9  ;;  %v162_v39 = vpack.c.bf16 %v138_v35, %v1480_v10 }
  0x39   :  { %737 = vmatpush.bf16.msrb.mxu0 %v1271_v56 }
  0x3a   :  { %751 = vmatpush.bf16.msrb.mxu1 %v1279_v57 }
  0x3b   :  { %765 = vmatpush.bf16.msrb.mxu2 %v1287_v58 }
  0x3c   :  { %779 = vmatpush.bf16.msrb.mxu3 %v1295_v59 }
  0x3d   :  { %738 = vmatpush.bf16.msrb.mxu0 %v1270_v11 }
  0x3e   :  { %752 = vmatpush.bf16.msrb.mxu1 %v1278_v12 }
  0x3f   :  { %766 = vmatpush.bf16.msrb.mxu2 %v1286_v14 }
  0x40   :  { %780 = vmatpush.bf16.msrb.mxu3 %v1294_v15 }
  0x41   :  { %739 = vmatpush.bf16.msrb.mxu0 %v1269_v16 }
  0x42   :  { %753 = vmatpush.bf16.msrb.mxu1 %v1277_v17 }
  0x43   :  { %767 = vmatpush.bf16.msrb.mxu2 %v1285_v18 }
  0x44   :  { %781 = vmatpush.bf16.msrb.mxu3 %v1293_v19 }
  0x45   :  { %740 = vmatpush.bf16.msrb.mxu0 %v1268_v20  ;;  %v1316_v20 = vld [vmem:[%s1509_s4] ss:$0 sm:$0xff] }
  0x46   :  { %754 = vmatpush.bf16.msrb.mxu1 %v1276_v21 }
  0x47   :  { %768 = vmatpush.bf16.msrb.mxu2 %v1284_v22 }
  0x48   :  { %782 = vmatpush.bf16.msrb.mxu3 %v1292_v23 }
  0x49   :  { %741 = vmatpush.bf16.msrb.mxu0 %v1267_v24 }
  0x4a   :  { %755 = vmatpush.bf16.msrb.mxu1 %v1275_v25 }
  0x4b   :  { %769 = vmatpush.bf16.msrb.mxu2 %v1283_v26 }
  0x4c   :  { %783 = vmatpush.bf16.msrb.mxu3 %v1291_v27 }
  0x4d   :  { %742 = vmatpush.bf16.msrb.mxu0 %v1266_v28 }
  0x4e   :  { %756 = vmatpush.bf16.msrb.mxu1 %v1274_v29 }
  0x4f   :  { %770 = vmatpush.bf16.msrb.mxu2 %v1282_v30 }
  0x50   :  { %784 = vmatpush.bf16.msrb.mxu3 %v1290_v31  ;;  %743 = vmatmul.bf16.vlgmr.msrb.gmra.mxu0 %v159_v36 }
  0x51   :  { %757 = vmatmul.bf16.vlgmr.msrb.gmra.mxu1 %v160_v37  ;;  %862 = vmatpush.bf16.msra.mxu0 %v1305_v40 }
  0x52   :  { %771 = vmatmul.bf16.vlgmr.msrb.gmra.mxu2 %v161_v38 }
  0x53   :  { %785 = vmatmul.bf16.vlgmr.msrb.gmra.mxu3 %v162_v39 }
  0x55   :  { %863 = vmatpush.bf16.msra.mxu0 %v1304_v41 }
  0x59   :  { %864 = vmatpush.bf16.msra.mxu0 %v1303_v42 }
  0x5d   :  { %865 = vmatpush.bf16.msra.mxu0 %v1302_v43 }
  0x61   :  { %866 = vmatpush.bf16.msra.mxu0 %v1301_v44 }
  0x65   :  { %867 = vmatpush.bf16.msra.mxu0 %v1300_v45 }
  0x69   :  { %868 = vmatpush.bf16.msra.mxu0 %v1299_v47 }
  0x6d   :  { %869 = vmatpush.bf16.msra.mxu0 %v1298_v49 }
  0xad   :  { %v688_v46 = vpop.f32.mrf.mxu0 }
  0xae   :  { %v702_v48 = vpop.f32.mrf.mxu1  ;;  %v689_v53 = vadd.f32 %v1315_v50, %v688_v46 }
  0xb0   :  { %v703_v56 = vadd.f32 %v702_v48, %v689_v53 }
  0xb5   :  { %v716_v51 = vpop.f32.mrf.mxu2  ;;  %v690_v54 = vpop.f32.mrf.mxu0 }
  0xb6   :  { %v730_v52 = vpop.f32.mrf.mxu3  ;;  %v704_v55 = vpop.f32.mrf.mxu1  ;;  %v691_v57 = vadd.f32 %v1315_v50, %v690_v54  ;;  %v717_v60 = vadd.f32 %v716_v51, %v703_v56 }
  0xb8   :  { %v705_v61 = vadd.f32 %v704_v55, %v691_v57  ;;  %v731_v0 = vadd.f32 %v730_v52, %v717_v60 }
  0xbd   :  { %v718_v58 = vpop.f32.mrf.mxu2 }
  0xbe   :  { %v732_v59 = vpop.f32.mrf.mxu3  ;;  %v719_v1 = vadd.f32 %v718_v58, %v705_v61 }
  0xc0   :  { %v733_v5 = vadd.f32 %v732_v59, %v719_v1 }
  0xcd   :  { %v744_v62 = vpop.f32.mrf.mxu0 }
  0xce   :  { %v758_v63 = vpop.f32.mrf.mxu1  ;;  %v745_v2 = vadd.f32 %v744_v62, %v731_v0 }
  0xd0   :  { %v759_v7 = vadd.f32 %v758_v63, %v745_v2 }
  0xd5   :  { %v772_v3 = vpop.f32.mrf.mxu2  ;;  %v746_v6 = vpop.f32.mrf.mxu0 }
  0xd6   :  { %v786_v4 = vpop.f32.mrf.mxu3  ;;  %v747_v8 = vadd.f32 %v746_v6, %v733_v5  ;;  %v773_v9 = vadd.f32 %v772_v3, %v759_v7  ;;  %v760_v10 = vpop.f32.mrf.mxu1 }
  0xd8   :  { %v761_v11 = vadd.f32 %v760_v10, %v747_v8  ;;  %v787_v13 = vadd.f32 %v786_v4, %v773_v9 }
  0xda   :  { %v791_v17 = vmax.f32 %v787_v13, 0.0 }
  0xdd   :  { %v774_v12 = vpop.f32.mrf.mxu2 }
  0xde   :  { %v775_v14 = vadd.f32 %v774_v12, %v761_v11  ;;  %v788_v15 = vpop.f32.mrf.mxu3 }
  0xe0   :  { %v789_v16 = vadd.f32 %v788_v15, %v775_v14 }
  0xe2   :  { %v792_v18 = vmax.f32 %v789_v16, 0.0 }
  0xe4   :  { %v793_v19 = vpack.c.bf16 %v792_v18, %v791_v17 }
  0xe6   :  { %870 = vmatmul.bf16.vlgmr.msra.gmra.mxu0 %v793_v19 }
 0x163   :  { %v871_v21 = vpop.f32.mrf.mxu0 }
 0x164   :  { %v872_v22 = vadd.f32 %v1316_v20, %v871_v21 }
 0x166   :  { %v876_v23 = vpack.c.bf16 %v872_v22, %v872_v22 }
 0x168   :  { %v880_v24 = vrot.slane %v876_v23, 3 }
 0x16a   :  { %v885_v25 = vsel %vm882_vm0, %v876_v23, %v880_v24  ;;  %v887_v26 = vsel %vm886_vm1, %v876_v23, %v880_v24  ;;  %v891_v27 = vsel %vm890_vm2, %v876_v23, %v880_v24  ;;  %v895_v28 = vsel %vm894_vm3, %v876_v23, %v880_v24 }
 0x16b   :  { %v889_v29 = vrot.slane %v887_v26, 1  ;;  %v893_v30 = vrot.slane %v891_v27, 2  ;;  %v897_v31 = vrot.slane %v895_v28, 3  ;;  %918 = vst [vmem:[#allocation8] sm:$0x1] %v885_v25  ;;  %v873_v32 = vpop.f32.mrf.mxu0 }
 0x16c   :  { %v874_v33 = vadd.f32 %v1316_v20, %v873_v32 }
 0x16d   :  { %919 = vst [vmem:[#allocation8 + $0x1] sm:$0x1] %v889_v29 }
 0x16e   :  { %920 = vst [vmem:[#allocation8 + $0x2] sm:$0x1] %v893_v30  ;;  %v877_v34 = vpack.c.bf16 %v874_v33, %v874_v33 }
 0x16f   :  { %921 = vst [vmem:[#allocation8 + $0x3] sm:$0x1] %v897_v31 }
 0x170   :  { %v881_v35 = vrot.slane %v877_v34, 3 }
 0x172   :  { %v900_v36 = vsel %vm882_vm0, %v877_v34, %v881_v35  ;;  %v901_v37 = vsel %vm886_vm1, %v877_v34, %v881_v35  ;;  %v904_v38 = vsel %vm890_vm2, %v877_v34, %v881_v35  ;;  %v907_v39 = vsel %vm894_vm3, %v877_v34, %v881_v35 }
 0x173   :  { %v903_v40 = vrot.slane %v901_v37, 1  ;;  %v906_v41 = vrot.slane %v904_v38, 2  ;;  %v909_v42 = vrot.slane %v907_v39, 3  ;;  %922 = vst [vmem:[#allocation8 + $0x4] sm:$0x1] %v900_v36 }
 0x175   :  { %923 = vst [vmem:[#allocation8 + $0x5] sm:$0x1] %v903_v40 }
 0x176   :  { %924 = vst [vmem:[#allocation8 + $0x6] sm:$0x1] %v906_v41 }
 0x177   :  { %925 = vst [vmem:[#allocation8 + $0x7] sm:$0x1] %v909_v42 }
 0x178   :  { %929 = vsyncadd [#allocation4], 112  ;;  %s932_s13 = sshll.u32 %s1510_s5, 4  ;;  %s1426_s14 = smov [#allocation8]   ;;  %s933_s13 = int_to_ptr.hbm [resolvable:$true] %s932_s13 }
 0x179   :  { %s930_s15 = sshll.u32 %s1426_s14, 4  ;;  %s1427_s16 = smov 1   ;;  %s931_s15 = int_to_ptr.vmem [resolvable:$true] %s930_s15 }
 0x17a   :  { %938 = dma.vmem_to_hbm [thread:$0]  %s931_s15, 16, %s933_s13, [#allocation4], %s1424_s6, %s1424_s6, %s1427_s16  }
 0x17b   :  { %1417 = dma.done.wait [#allocation4], 128  }
 0x17c   :  { %1418 = vsyncadd [#allocation4], 4294967168 }
 0x17d   :  { %943 = vsyncpa [#allocation3], 1 }
 0x17e   :  { %944 = vsyncpa [#allocation6], 1 }
 0x17f   :  { %945 = vsyncpa [#allocation4], 1 }

</bundles_post_ra>
